<compile_context>
chip_gen: v7x
topology: tpu7x:2x2x1
jax: 0.10.0
libtpu: 0.0.40
codegen_flags: <defaults>
</compile_context>

<pallas_src>
import functools
import math

import jax
import jax.numpy as jnp
from jax.experimental import pallas as pl
from jax.experimental.pallas import tpu as pltpu


# ---------------------------------------------------------------------------
# Helpers
# ---------------------------------------------------------------------------

def _round_up(x, m):
    return ((x + m - 1) // m) * m


def _cdiv(a, b):
    return (a + b - 1) // b


def _detect_tpu():
    """Best-effort generation detection.

    Returns (vmem_budget_bytes, num_tensorcores_per_chip). The budget leaves
    headroom below physical VMEM for Mosaic's internal scratch:
      v5e / v6e : 128 MiB physical -> ~96 MiB budget, 1 TensorCore
      v7x       :  64 MiB physical -> ~48 MiB budget, 2 TensorCores
    Falls back to a conservative (48 MiB, 1 core) if detection fails.
    """
    try:
        kind = jax.devices()[0].device_kind.lower()
    except Exception:
        return 48 * 1024 * 1024, 1
    vmem_physical = 128 * 1024 * 1024
    num_cores = 1
    if "v7" in kind:
        vmem_physical = 64 * 1024 * 1024
        num_cores = 2
    try:
        info_vmem = int(pltpu.get_tpu_info().vmem_capacity_bytes)
        if info_vmem >= 16 * 1024 * 1024:
            vmem_physical = info_vmem
    except Exception:
        pass
    budget = (vmem_physical * 3) // 4
    if "v7" in kind:
        budget = min(budget, 48 * 1024 * 1024)
    return budget, num_cores


def _best_tile(dim, cap, mult):
    """Largest multiple of `mult` (<= cap) that MINIMIZES round_up(dim, tile).

    Padding-aware: prefers the tile creating the least padded work; ties are
    broken toward the larger tile (longer DMAs, fewer grid steps).
    """
    dim = max(int(dim), 1)
    cap = max(mult, min(_round_up(cap, mult), _round_up(dim, mult)))
    candidates = range(mult, cap + 1, mult)
    return min(candidates, key=lambda t: (_round_up(dim, t), -t))


# ---------------------------------------------------------------------------
# Kernels
# ---------------------------------------------------------------------------

def _matmul_bias_kernel(x_ref, w_ref, b_ref, o_ref, acc_ref, *,
                        compute_dtype, precision):
    # Fold the bias into the f32 accumulator initialization (k == 0) so the
    # last-K epilogue is just a cast + store.
    @pl.when(pl.program_id(2) == 0)
    def _init():
        acc_ref[...] = jnp.broadcast_to(
            b_ref[...].astype(jnp.float32), acc_ref.shape)

    acc_ref[...] += jnp.dot(
        x_ref[...].astype(compute_dtype),
        w_ref[...].astype(compute_dtype),
        preferred_element_type=jnp.float32,
        precision=precision,
    )

    @pl.when(pl.program_id(2) == pl.num_programs(2) - 1)
    def _store():
        o_ref[...] = acc_ref[...].astype(o_ref.dtype)


def _matmul_nobias_kernel(x_ref, w_ref, o_ref, acc_ref, *,
                          compute_dtype, precision):
    @pl.when(pl.program_id(2) == 0)
    def _init():
        acc_ref[...] = jnp.zeros_like(acc_ref)

    acc_ref[...] += jnp.dot(
        x_ref[...].astype(compute_dtype),
        w_ref[...].astype(compute_dtype),
        preferred_element_type=jnp.float32,
        precision=precision,
    )

    @pl.when(pl.program_id(2) == pl.num_programs(2) - 1)
    def _store():
        o_ref[...] = acc_ref[...].astype(o_ref.dtype)


# ---------------------------------------------------------------------------
# Jitted hot path (only x is padded/sliced here; weight/bias already prepared)
# ---------------------------------------------------------------------------

@functools.partial(
    jax.jit,
    static_argnames=("m", "n", "mp", "npd", "kp", "tm", "tn", "tk", "n_wbuf",
                     "compute_dtype", "precision", "vmem_limit"))
def _row_linear_padded(x2d, weight_p, bias_p, *, m, n, mp, npd, kp, tm, tn, tk,
                       n_wbuf, compute_dtype, precision, vmem_limit):
    M, K = x2d.shape
    # Zero-pad only x per call (zeros along K contribute nothing to the
    # partial sums); weight/bias were padded once at prepare time.
    if (mp, kp) != (M, K):
        x2d = jnp.pad(x2d, ((0, mp - M), (0, kp - K)))

    grid_m, grid_n, grid_k = mp // tm, npd // tn, kp // tk

    xbytes = jnp.dtype(x2d.dtype).itemsize
    wbytes = jnp.dtype(weight_p.dtype).itemsize
    bias_bytes = 0 if bias_p is None else npd * jnp.dtype(bias_p.dtype).itemsize
    cost = pl.CostEstimate(
        flops=2 * mp * npd * kp,
        transcendentals=0,
        # Account for re-reads across the grid: x is streamed once per N tile,
        # the weight (and bias) once per M tile, output written once.
        bytes_accessed=(mp * kp * xbytes * grid_n
                        + kp * npd * wbytes * grid_m
                        + mp * npd * xbytes
                        + bias_bytes * grid_m),
    )

    x_spec = pl.BlockSpec((tm, tk), lambda i, j, k: (i, k))
    w_index = lambda i, j, k: (k, j)
    w_spec = pl.BlockSpec((tk, tn), w_index)
    if n_wbuf > 2 and hasattr(pl, "Buffered"):
        # Deeper buffering on the dominant (weight) stream hides DMA issue
        # latency for long, weight-bandwidth-bound pipelines (decode shapes).
        try:
            w_spec = pl.BlockSpec((tk, tn), w_index,
                                  pipeline_mode=pl.Buffered(n_wbuf))
        except TypeError:  # older BlockSpec without pipeline_mode
            w_spec = pl.BlockSpec((tk, tn), w_index)

    if bias_p is not None:
        kernel = functools.partial(_matmul_bias_kernel,
                                   compute_dtype=compute_dtype,
                                   precision=precision)
        in_specs = [x_spec, w_spec,
                    pl.BlockSpec((1, tn), lambda i, j, k: (0, j))]
        operands = (x2d, weight_p, bias_p)
    else:
        kernel = functools.partial(_matmul_nobias_kernel,
                                   compute_dtype=compute_dtype,
                                   precision=precision)
        in_specs = [x_spec, w_spec]
        operands = (x2d, weight_p)

    out = pl.pallas_call(
        kernel,
        out_shape=jax.ShapeDtypeStruct((mp, npd), x2d.dtype),
        grid_spec=pltpu.PrefetchScalarGridSpec(
            num_scalar_prefetch=0,
            grid=(grid_m, grid_n, grid_k),
            in_specs=in_specs,
            out_specs=pl.BlockSpec((tm, tn), lambda i, j, k: (i, j)),
            scratch_shapes=[pltpu.VMEM((tm, tn), jnp.float32)],
        ),
        compiler_params=pltpu.CompilerParams(
            dimension_semantics=("parallel", "parallel", "arbitrary"),
            vmem_limit_bytes=vmem_limit,
        ),
        cost_estimate=cost,
    )(*operands)

    if (mp, npd) != (m, n):
        out = out[:m, :n]
    return out


# ---------------------------------------------------------------------------
# Public API
# ---------------------------------------------------------------------------

def prepare_row_linear(weight, bias=None, *, mxu_dtype=None, precision=None,
                       tn=None, tk=None):
    """One-time (load-time) preparation of TensorParallelRowLinear params.

    * Optionally casts the weight to `mxu_dtype` (e.g. jnp.bfloat16): native
      MXU rate on v5e/v6e/v7x and half the weight HBM traffic. Accumulation
      stays f32. For bit-level f32 parity with the PyTorch reference, leave
      mxu_dtype=None and pass precision=jax.lax.Precision.HIGHEST explicitly.
    * Pads weight/bias to tile multiples ONCE here, so the per-call hot path
      never copies the weight.
    * Picks padding-aware, generation-aware (tn, tk) tiles.
    """
    K, N = weight.shape
    vmem_budget, num_cores = _detect_tpu()

    if mxu_dtype is not None:
        weight = weight.astype(mxu_dtype)
    compute_dtype = jnp.dtype(weight.dtype)

    if num_cores >= 2:       # v7x: 64 MiB VMEM per TensorCore, 2 cores
        tm_cap, tn_cap, tk_cap = 256, 512, 1024
    else:                    # v5e / v6e: 128 MiB VMEM -> bigger tiles, more
        tm_cap, tn_cap, tk_cap = 512, 1024, 2048   # weight reuse per fetch

    if tn is None:
        tn = _best_tile(N, tn_cap, 128)
        # v7x megacore: give each TensorCore its own weight strip along N.
        # (Splitting a tiny M instead would make both cores stream the full
        # weight -> 2x traffic on the shared HBM.)
        if num_cores >= 2 and tn >= N and N > 128:
            half_cap = max(128, ((_round_up(N, 128) // 2) // 128) * 128)
            tn = _best_tile(N, half_cap, 128)
    if tk is None:
        tk = _best_tile(K, tk_cap, 128)
    assert tn % 128 == 0 and tk % 128 == 0

    Kp, Np = _round_up(K, tk), _round_up(N, tn)
    if (Kp, Np) != (K, N):
        weight = jnp.pad(weight, ((0, Kp - K), (0, Np - N)))

    has_bias = bias is not None
    bias_p = None
    if has_bias:
        bias_p = jnp.asarray(bias).reshape(1, N)
        if Np != N:
            bias_p = jnp.pad(bias_p, ((0, 0), (0, Np - N)))

    return dict(
        weight=weight, bias=bias_p, has_bias=has_bias,
        k=K, n=N, kp=Kp, npd=Np, tn=tn, tk=tk,
        compute_dtype=compute_dtype, precision=precision,
        tm_cap=tm_cap, vmem_budget=vmem_budget, num_cores=num_cores,
    )


def tensor_parallel_row_linear(x, params, *, tm=None):
    """out = x @ weight + bias, then AllReduce (identity here, matching the
    single-process reference AllReduce.forward)."""
    # TODO(synk): in a real tensor-parallel deployment the all-reduce is a
    # psum over the TP axis (jax.lax.psum outside, or a remote-DMA collective
    # fused into the kernel); here it is the identity like the reference.
    *lead, K = x.shape
    assert K == params["k"], (K, params["k"])
    M = int(math.prod(lead)) if lead else 1
    x2d = x.reshape(M, K)

    tn, tk = params["tn"], params["tk"]
    Np, Kp = params["npd"], params["kp"]
    xbytes = jnp.dtype(x.dtype).itemsize
    sublane = 16 if xbytes == 2 else 8
    if tm is None:
        tm = _best_tile(M, params["tm_cap"], sublane)

    wbytes = jnp.dtype(params["compute_dtype"]).itemsize
    bbytes = jnp.dtype(params["bias"].dtype).itemsize if params["has_bias"] else 0

    def footprint(tm_, n_wbuf):
        return (2 * tm_ * tk * xbytes          # x tiles (double-buffered)
                + n_wbuf * tk * tn * wbytes    # weight tiles
                + 2 * tm_ * tn * xbytes        # output tiles
                + tm_ * tn * 4                 # f32 accumulator scratch
                + 2 * tn * bbytes)             # bias tile

    budget = params["vmem_budget"]
    # Tile caps are sized to fit the budget; this shrink is a safety net for
    # explicit tile overrides.
    while footprint(tm, 2) > budget and tm > sublane:
        tm = max(sublane, _round_up(tm // 2, sublane))

    Mp = _round_up(M, tm)
    grid_m, grid_n, grid_k = Mp // tm, Np // tn, Kp // tk
    # Triple-buffer the weight only for long pipelines where it pays off.
    n_wbuf = 3 if (grid_k >= 2 and grid_m * grid_n * grid_k >= 12
                   and footprint(tm, 3) <= budget) else 2

    out2d = _row_linear_padded(
        x2d, params["weight"], params["bias"],
        m=M, n=params["n"], mp=Mp, npd=Np, kp=Kp,
        tm=tm, tn=tn, tk=tk, n_wbuf=n_wbuf,
        compute_dtype=params["compute_dtype"], precision=params["precision"],
        vmem_limit=budget,
    )
    return out2d.reshape(*lead, params["n"])


def row_linear(x, weight, bias=None, **prepare_kwargs):
    """Convenience one-shot wrapper. For repeated calls, hoist
    prepare_row_linear() (it pads / casts the weight) out of the hot path."""
    return tensor_parallel_row_linear(
        x, prepare_row_linear(weight, bias, **prepare_kwargs))


def init_params(key, in_features_per_shard, out_features, dtype=jnp.float32):
    """Deterministic init mirroring the module's reset_parameters()."""
    kw, kb = jax.random.split(key)
    # kaiming_uniform_(a=sqrt(5)) on a weight of shape (in, out): torch's
    # fan_in for a 2-D tensor is weight.shape[1] (= out_features here).
    fan_in = out_features
    bound_w = math.sqrt(1.0 / fan_in)
    weight = jax.random.uniform(
        kw, (in_features_per_shard, out_features), dtype,
        minval=-bound_w, maxval=bound_w)
    bound_b = 1.0 / math.sqrt(fan_in) if fan_in > 0 else 0.0
    bias = jax.random.uniform(
        kb, (out_features,), dtype, minval=-bound_b, maxval=bound_b)
    return weight, bias


if __name__ == "__main__":
    key = jax.random.PRNGKey(0)
    k_x1, k_p1, k_x2, k_p2, k_x3, k_p3 = jax.random.split(key, 6)

    # Case 1: tile-aligned shapes (tp_world_size=2 over global in_features=512):
    # batch=2, seq=8, per-shard in_features=256, out_features=128.
    batch, seq = 2, 8
    in_per_shard, out_features = 256, 128
    x1 = jax.random.normal(k_x1, (batch, seq, in_per_shard), dtype=jnp.float32)
    w1, b1 = init_params(k_p1, in_per_shard, out_features)
    params1 = prepare_row_linear(w1, b1)          # load-time: pads once
    out1 = jax.block_until_ready(tensor_parallel_row_linear(x1, params1))
    ref1 = (x1.reshape(-1, in_per_shard) @ w1 + b1).reshape(batch, seq, out_features)
    assert out1.shape == ref1.shape
    assert jnp.allclose(out1, ref1, atol=1e-4, rtol=1e-4)

    # Case 2: awkward (non-tile-aligned) shapes + no bias (exercises padding
    # and the bias-free kernel path).
    b2, s2, k2, n2 = 3, 5, 200, 96
    x2 = jax.random.normal(k_x2, (b2, s2, k2), dtype=jnp.float32)
    w2, _ = init_params(k_p2, k2, n2)
    params2 = prepare_row_linear(w2, bias=None)
    out2 = jax.block_until_ready(tensor_parallel_row_linear(x2, params2))
    ref2 = (x2.reshape(-1, k2) @ w2).reshape(b2, s2, n2)
    assert out2.shape == ref2.shape
    assert jnp.allclose(out2, ref2, atol=1e-4, rtol=1e-4)

    # Case 3: bf16 MXU path + forced small tk to exercise multi-step K
    # accumulation (grid_k > 1).
    m3, k3, n3 = 8, 512, 256
    x3 = jax.random.normal(k_x3, (m3, k3), dtype=jnp.float32)
    w3, b3 = init_params(k_p3, k3, n3)
    params3 = prepare_row_linear(w3, b3, mxu_dtype=jnp.bfloat16, tk=128)
    out3 = jax.block_until_ready(tensor_parallel_row_linear(x3, params3))
    ref3 = x3 @ w3 + b3
    assert out3.shape == ref3.shape
    assert jnp.allclose(out3, ref3, atol=3e-2, rtol=3e-2)

    print("KERNEL_OK")
</pallas_src>

<mosaic_0001>
module attributes {stable_mosaic.version = 11 : i64} {
  func.func @_matmul_bias_kernel(%arg0: i32, %arg1: i32, %arg2: i32, %arg3: memref<16x256xf32, #tpu.memory_space<vmem>>, %arg4: memref<256x128xf32, #tpu.memory_space<vmem>>, %arg5: memref<1x128xf32, #tpu.memory_space<vmem>>, %arg6: memref<16x128xf32, #tpu.memory_space<vmem>>, %arg7: memref<16x128xf32, #tpu.memory_space<vmem>>) attributes {dimension_semantics = [#tpu.dimension_semantics<parallel>, #tpu.dimension_semantics<parallel>, #tpu.dimension_semantics<arbitrary>], iteration_bounds = array<i64: 1, 1, 1>, scalar_prefetch = 0 : i64, scratch_operands = 1 : i64, tpu.core_type = #tpu.core_type<tc>, window_params = [{transform_indices = @transform_0, window_bounds = array<i64: 16, 256>}, {transform_indices = @transform_1, window_bounds = array<i64: 256, 128>}, {transform_indices = @transform_2, window_bounds = array<i64: 1, 128>}, {transform_indices = @transform_3, window_bounds = array<i64: 16, 128>}]} {
    %c0_i32 = arith.constant 0 : i32
    %0 = arith.cmpi eq, %arg2, %c0_i32 : i32
    %1 = arith.extui %0 : i1 to i32
    %c0_i32_0 = arith.constant 0 : i32
    %2 = arith.cmpi ne, %1, %c0_i32_0 : i32
    scf.if %2 {
      %c0_10 = arith.constant 0 : index
      %c0_11 = arith.constant 0 : index
      %12 = vector.load %arg5[%c0_10, %c0_11] : memref<1x128xf32, #tpu.memory_space<vmem>>, vector<1x128xf32>
      %13 = vector.shape_cast %12 : vector<1x128xf32> to vector<1x128xf32>
      %14 = vector.broadcast %13 : vector<1x128xf32> to vector<16x128xf32>
      %c0_12 = arith.constant 0 : index
      %c0_13 = arith.constant 0 : index
      %15 = vector.load %arg7[%c0_12, %c0_13] : memref<16x128xf32, #tpu.memory_space<vmem>>, vector<16x128xf32>
      tpu.vector_store %arg7[%c0_12, %c0_13], %14 {strides = array<i32>} : memref<16x128xf32, #tpu.memory_space<vmem>>, vector<16x128xf32>,
    } else {
    }
    %c0 = arith.constant 0 : index
    %c0_1 = arith.constant 0 : index
    %3 = vector.load %arg7[%c0, %c0_1] : memref<16x128xf32, #tpu.memory_space<vmem>>, vector<16x128xf32>
    %c0_2 = arith.constant 0 : index
    %c0_3 = arith.constant 0 : index
    %4 = vector.load %arg3[%c0_2, %c0_3] : memref<16x256xf32, #tpu.memory_space<vmem>>, vector<16x256xf32>
    %c0_4 = arith.constant 0 : index
    %c0_5 = arith.constant 0 : index
    %5 = vector.load %arg4[%c0_4, %c0_5] : memref<256x128xf32, #tpu.memory_space<vmem>>, vector<256x128xf32>
    %cst = arith.constant dense<0.000000e+00> : vector<16x128xf32>
    %6 = tpu.matmul %4, %5, %cst {dimension_numbers = #tpu.dot_dimension_numbers<[1], [0], [0], [1], [0, 0, 1, 1], [], []>} : vector<16x256xf32>, vector<256x128xf32>, vector<16x128xf32> -> vector<16x128xf32>
    %7 = arith.addf %3, %6 : vector<16x128xf32>
    %c0_6 = arith.constant 0 : index
    %c0_7 = arith.constant 0 : index
    %8 = vector.load %arg7[%c0_6, %c0_7] : memref<16x128xf32, #tpu.memory_space<vmem>>, vector<16x128xf32>
    tpu.vector_store %arg7[%c0_6, %c0_7], %7 {strides = array<i32>} : memref<16x128xf32, #tpu.memory_space<vmem>>, vector<16x128xf32>,
    %c0_i32_8 = arith.constant 0 : i32
    %9 = arith.cmpi eq, %arg2, %c0_i32_8 : i32
    %10 = arith.extui %9 : i1 to i32
    %c0_i32_9 = arith.constant 0 : i32
    %11 = arith.cmpi ne, %10, %c0_i32_9 : i32
    scf.if %11 {
      %c0_10 = arith.constant 0 : index
      %c0_11 = arith.constant 0 : index
      %12 = vector.load %arg7[%c0_10, %c0_11] : memref<16x128xf32, #tpu.memory_space<vmem>>, vector<16x128xf32>
      %c0_12 = arith.constant 0 : index
      %c0_13 = arith.constant 0 : index
      %13 = vector.load %arg6[%c0_12, %c0_13] : memref<16x128xf32, #tpu.memory_space<vmem>>, vector<16x128xf32>
      tpu.vector_store %arg6[%c0_12, %c0_13], %12 {strides = array<i32>} : memref<16x128xf32, #tpu.memory_space<vmem>>, vector<16x128xf32>,
    } else {
    }
    return
  }
  func.func @transform_0(%arg0: i32, %arg1: i32, %arg2: i32) -> (i32, i32) {
    %c0_i32 = arith.constant 0 : i32
    return %arg0, %arg2 : i32, i32
  }
  func.func @transform_1(%arg0: i32, %arg1: i32, %arg2: i32) -> (i32, i32) {
    %c0_i32 = arith.constant 0 : i32
    return %arg2, %arg1 : i32, i32
  }
  func.func @transform_2(%arg0: i32, %arg1: i32, %arg2: i32) -> (i32, i32) {
    %c0_i32 = arith.constant 0 : i32
    %c0_i32_0 = arith.constant 0 : i32
    return %c0_i32, %arg1 : i32, i32
  }
  func.func @transform_3(%arg0: i32, %arg1: i32, %arg2: i32) -> (i32, i32) {
    %c0_i32 = arith.constant 0 : i32
    return %arg0, %arg1 : i32, i32
  }
}

</mosaic_0001>

<bundles_post_ra>
// kernel: _row_linear_padded.1
= control target key start
LH: loop header
LB: loop body
LE: loop exit
PB: predicated region body
PF: predicated region fallthrough
CT: control target
= control target key end

     0   :  { %8 = vsyncpa [#allocation4], 0  ;;  %s480_s0 = inlined_call_operand.hbm [shape: f32[16,256], index: 0, kind: input, shape index: {}]   ;;  %s481_s1 = inlined_call_operand.hbm [shape: f32[256,128], index: 1, kind: input, shape index: {}]   ;;  %s482_s2 = inlined_call_operand.hbm [shape: f32[1,128], index: 2, kind: input, shape index: {}]   ;;  %s483_s3 = inlined_call_operand.hbm [shape: f32[16,128], index: 3, kind: output, shape index: {}]  }
   0x1   :  { %9 = vsyncpa [#allocation7], 0 }
   0x2   :  { %10 = vsyncpa [#allocation5], 0  ;;  %s398_s12 = smov [#allocation6]   ;;  %s304_s16 = scalar_lea.hbm %s481_s1, 4096 }
   0x3   :  { %s28_s13 = sshll.u32 %s398_s12, 4  ;;  %p305_p0 = scmp.ne.s32.totalorder %s481_s1, %s304_s16  ;;  %s29_s13 = int_to_ptr.vmem [resolvable:$true] %s28_s13 }
   0x4   :  { %p308_p1 = scmp.lt.u32.totalorder %s304_s16, %s481_s1 }
   0x6   :  { %p310_p2 = pnand %p308_p1, %p305_p0 }
   0x8   :  { %313 = shalt.err (!%p310_p2)
}
   0x9   :  { %s314_s21 = scalar_lea.vmem %s29_s13, 4096  ;;  %p319_p4 = scmp.lt.s32.totalorder %s29_s13, %s29_s13 }
   0xa   :  { %p315_p3 = scmp.ne.s32.totalorder %s29_s13, %s314_s21  ;;  %p320_p5 = scmp.lt.s32.totalorder %s314_s21, %s314_s21 }
   0xc   :  { %p321_p6 = por %p320_p5, %p319_p4 }
   0xe   :  { %p322_p7 = pnand %p321_p6, %p315_p3 }
  0x10   :  { %325 = shalt.err (!%p322_p7)
}
  0x11   :  { %s399_s22 = smov 128   ;;  %s400_s23 = smov 8  }
  0x12   :  { %34 = dma.hbm_to_vmem [thread:$0]  %s481_s1, 4096, %s29_s13, [#allocation7], %s399_s22, %s399_s22, %s400_s23  }
  0x13   :  { %s401_s26 = smov [#allocation3]   ;;  %s326_s30 = scalar_lea.hbm %s480_s0, 512 }
  0x14   :  { %s16_s27 = sshll.u32 %s401_s26, 4  ;;  %p327_p8 = scmp.ne.s32.totalorder %s480_s0, %s326_s30  ;;  %s17_s27 = int_to_ptr.vmem [resolvable:$true] %s16_s27 }
  0x15   :  { %p330_p9 = scmp.lt.u32.totalorder %s326_s30, %s480_s0 }
  0x17   :  { %p332_p10 = pnand %p330_p9, %p327_p8 }
  0x19   :  { %335 = shalt.err (!%p332_p10)
}
  0x1a   :  { %s336_s8 = scalar_lea.vmem %s17_s27, 512  ;;  %p341_p12 = scmp.lt.s32.totalorder %s17_s27, %s17_s27 }
  0x1b   :  { %p337_p11 = scmp.ne.s32.totalorder %s17_s27, %s336_s8  ;;  %p342_p13 = scmp.lt.s32.totalorder %s336_s8, %s336_s8 }
  0x1d   :  { %p343_p0 = por %p342_p13, %p341_p12 }
  0x1f   :  { %p344_p1 = pnand %p343_p0, %p337_p11 }
  0x21   :  { %347 = shalt.err (!%p344_p1)
}
  0x22   :  { %s402_s1 = smov 256   ;;  %s403_s9 = smov 16  }
  0x23   :  { %22 = dma.hbm_to_vmem [thread:$0]  %s480_s0, 512, %s17_s27, [#allocation4], %s402_s1, %s402_s1, %s403_s9  }
  0x24   :  { %s404_s12 = smov [#allocation8]   ;;  %s348_s16 = scalar_lea.hbm %s482_s2, 16 }
  0x25   :  { %s41_s13 = sshll.u32 %s404_s12, 4  ;;  %p349_p2 = scmp.ne.s32.totalorder %s482_s2, %s348_s16  ;;  %s42_s13 = int_to_ptr.vmem [resolvable:$true] %s41_s13 }
  0x26   :  { %p352_p3 = scmp.lt.u32.totalorder %s348_s16, %s482_s2 }
  0x28   :  { %p354_p4 = pnand %p352_p3, %p349_p2 }
  0x2a   :  { %357 = shalt.err (!%p354_p4)
}
  0x2b   :  { %s358_s21 = scalar_lea.vmem %s42_s13, 16  ;;  %s362_s0 = scalar_lea.vmem %s42_s13, 32 }
  0x2c   :  { %p359_p5 = scmp.ne.s32.totalorder %s42_s13, %s358_s21  ;;  %p363_p6 = scmp.lt.s32.totalorder %s42_s13, %s42_s13 }
  0x2d   :  { %p364_p7 = scmp.lt.s32.totalorder %s362_s0, %s358_s21 }
  0x2f   :  { %p365_p8 = por %p364_p7, %p363_p6 }
  0x31   :  { %p366_p9 = pnand %p365_p8, %p359_p5 }
  0x33   :  { %369 = shalt.err (!%p366_p9)
}
  0x34   :  { %44 = dma.hbm_to_vmem [thread:$0]  %s482_s2, 16, %s42_s13, [#allocation7]  }
  0x35   :  { %392 = dma.done.wait [#allocation4], 512  }
  0x36   :  { %393 = vsyncadd [#allocation4], 4294966784 }
  0x37   :  { %394 = dma.done.wait [#allocation7], 4112  }
  0x38   :  { %395 = vsyncadd [#allocation7], 4294963184  ;;  %v89_v0 = vld [vmem:[#allocation6 + $0x80] sm:$0xff]  ;;  %v90_v1 = vld [vmem:[#allocation6 + $0x88] sm:$0xff]  ;;  %s405_s2 = smov [#allocation9]  }
  0x39   :  { %v73_v2 = vld [vmem:[#allocation6] sm:$0xff]  ;;  %v248_v3 = vpack.c.bf16 %v90_v1, %v89_v0  ;;  %v74_v4 = vld [vmem:[#allocation6 + $0x8] sm:$0xff]  ;;  %v91_v5 = vld [vmem:[#allocation6 + $0x90] sm:$0xff]  ;;  %s196_s26 = sshll.u32 %s405_s2, 4  ;;  %s197_s26 = int_to_ptr.vmem [resolvable:$true] %s196_s26 }
  0x3a   :  { %v92_v6 = vld [vmem:[#allocation6 + $0x98] sm:$0xff]  ;;  %v250_v7 = vpack.c.bf16 %v74_v4, %v73_v2  ;;  %v75_v9 = vld [vmem:[#allocation6 + $0x10] sm:$0xff]  ;;  %v93_v11 = vld [vmem:[#allocation6 + $0xa0] sm:$0xff]  ;;  %s370_s27 = scalar_lea.vmem %s197_s26, 256  ;;  %p375_p11 = scmp.lt.s32.totalorder %s197_s26, %s197_s26 }
  0x3b   :  { %v252_v8 = vpack.c.bf16 %v92_v6, %v91_v5  ;;  %v76_v10 = vld [vmem:[#allocation6 + $0x18] sm:$0xff]  ;;  %249 = vmatprep.subr.bf16.mxu0 %v248_v3  ;;  %280 = vmatprep.subr.bf16.mxu1 %v248_v3  ;;  %v94_v12 = vld [vmem:[#allocation6 + $0xa8] sm:$0xff]  ;;  %v77_v15 = vld [vmem:[#allocation6 + $0x20] sm:$0xff]  ;;  %p371_p10 = scmp.ne.s32.totalorder %s197_s26, %s370_s27  ;;  %p376_p12 = scmp.lt.s32.totalorder %s370_s27, %s370_s27 }
  0x3c   :  { %251 = vmatpush3.bf16.msra.mxu0 %v250_v7  ;;  %288 = vmatpush3.bf16.msra.mxu1 %v250_v7  ;;  %v254_v13 = vpack.c.bf16 %v76_v10, %v75_v9  ;;  %v256_v14 = vpack.c.bf16 %v94_v12, %v93_v11  ;;  %v78_v16 = vld [vmem:[#allocation6 + $0x28] sm:$0xff]  ;;  %v95_v17 = vld [vmem:[#allocation6 + $0xb0] sm:$0xff]  ;;  %v96_v18 = vld [vmem:[#allocation6 + $0xb8] sm:$0xff] }
  0x3d   :  { %253 = vmatprep.subr.bf16.mxu0 %v252_v8  ;;  %281 = vmatprep.subr.bf16.mxu1 %v252_v8  ;;  %v258_v19 = vpack.c.bf16 %v78_v16, %v77_v15  ;;  %v260_v20 = vpack.c.bf16 %v96_v18, %v95_v17  ;;  %v79_v21 = vld [vmem:[#allocation6 + $0x30] sm:$0xff]  ;;  %v80_v22 = vld [vmem:[#allocation6 + $0x38] sm:$0xff]  ;;  %v97_v23 = vld [vmem:[#allocation6 + $0xc0] sm:$0xff]  ;;  %p377_p13 = por %p376_p12, %p375_p11 }
  0x3e   :  { %v98_v24 = vld [vmem:[#allocation6 + $0xc8] sm:$0xff]  ;;  %v72_v26 = vld [vmem:[#allocation3 + $0x18] sm:$0xff]  ;;  %v262_v27 = vpack.c.bf16 %v80_v22, %v79_v21  ;;  %v81_v29 = vld [vmem:[#allocation6 + $0x40] sm:$0xff] }
  0x3f   :  { %v70_v25 = vld [vmem:[#allocation3 + $0x8] sm:$0xff]  ;;  %v264_v28 = vpack.c.bf16 %v98_v24, %v97_v23  ;;  %v99_v31 = vld [vmem:[#allocation6 + $0xd0] sm:$0xff]  ;;  %v100_v32 = vld [vmem:[#allocation6 + $0xd8] sm:$0xff]  ;;  %174 = vmatprep.mubr.f32.mxu1 %v72_v26  ;;  %p378_p0 = pnand %p377_p13, %p371_p10 }
  0x40   :  { %255 = vmatpush3.bf16.msra.mxu0 %v254_v13  ;;  %289 = vmatpush3.bf16.msra.mxu1 %v254_v13  ;;  %v82_v30 = vld [vmem:[#allocation6 + $0x48] sm:$0xff]  ;;  %v268_v34 = vpack.c.bf16 %v100_v32, %v99_v31  ;;  %v83_v35 = vld [vmem:[#allocation6 + $0x50] sm:$0xff]  ;;  %v84_v36 = vld [vmem:[#allocation6 + $0x58] sm:$0xff] }
  0x41   :  { %257 = vmatprep.subr.bf16.mxu0 %v256_v14  ;;  %282 = vmatprep.subr.bf16.mxu1 %v256_v14  ;;  %v266_v33 = vpack.c.bf16 %v82_v30, %v81_v29  ;;  %v101_v37 = vld [vmem:[#allocation6 + $0xe0] sm:$0xff]  ;;  %v102_v38 = vld [vmem:[#allocation6 + $0xe8] sm:$0xff]  ;;  %v270_v39 = vpack.c.bf16 %v84_v36, %v83_v35  ;;  %v103_v43 = vld [vmem:[#allocation6 + $0xf0] sm:$0xff] }
  0x42   :  { %169 = vmatprep.mubr.f32.mxu0 %v70_v25  ;;  %v272_v40 = vpack.c.bf16 %v102_v38, %v101_v37  ;;  %v85_v41 = vld [vmem:[#allocation6 + $0x60] sm:$0xff]  ;;  %v86_v42 = vld [vmem:[#allocation6 + $0x68] sm:$0xff]  ;;  %v104_v44 = vld [vmem:[#allocation6 + $0xf8] sm:$0xff] }
  0x43   :  { %v274_v45 = vpack.c.bf16 %v86_v42, %v85_v41  ;;  %v276_v46 = vpack.c.bf16 %v104_v44, %v103_v43  ;;  %v87_v47 = vld [vmem:[#allocation6 + $0x70] sm:$0xff]  ;;  %v88_v48 = vld [vmem:[#allocation6 + $0x78] sm:$0xff]  ;;  %v69_v50 = vld [vmem:[#allocation3] sm:$0xff] }
  0x44   :  { %259 = vmatpush3.bf16.msra.mxu0 %v258_v19  ;;  %290 = vmatpush3.bf16.msra.mxu1 %v258_v19  ;;  %v278_v49 = vpack.c.bf16 %v88_v48, %v87_v47  ;;  %v71_v51 = vld [vmem:[#allocation3 + $0x10] sm:$0xff]  ;;  %v209_v54 = vld [vmem:[#allocation8] ss:$0 sm:$0xff] }
  0x45   :  { %261 = vmatprep.subr.bf16.mxu0 %v260_v20  ;;  %283 = vmatprep.subr.bf16.mxu1 %v260_v20 }
  0x48   :  { %263 = vmatpush3.bf16.msra.mxu0 %v262_v27  ;;  %291 = vmatpush3.bf16.msra.mxu1 %v262_v27 }
  0x49   :  { %265 = vmatprep.subr.bf16.mxu0 %v264_v28  ;;  %284 = vmatprep.subr.bf16.mxu1 %v264_v28 }
  0x4c   :  { %267 = vmatpush3.bf16.msra.mxu0 %v266_v33  ;;  %292 = vmatpush3.bf16.msra.mxu1 %v266_v33 }
  0x4d   :  { %269 = vmatprep.subr.bf16.mxu0 %v268_v34  ;;  %285 = vmatprep.subr.bf16.mxu1 %v268_v34 }
  0x50   :  { %271 = vmatpush3.bf16.msra.mxu0 %v270_v39  ;;  %293 = vmatpush3.bf16.msra.mxu1 %v270_v39 }
  0x51   :  { %273 = vmatprep.subr.bf16.mxu0 %v272_v40  ;;  %286 = vmatprep.subr.bf16.mxu1 %v272_v40 }
  0x54   :  { %275 = vmatpush3.bf16.msra.mxu0 %v274_v45  ;;  %294 = vmatpush3.bf16.msra.mxu1 %v274_v45 }
  0x55   :  { %277 = vmatprep.subr.bf16.mxu0 %v276_v46  ;;  %287 = vmatprep.subr.bf16.mxu1 %v276_v46 }
  0x58   :  { %279 = vmatpush3.bf16.msra.mxu0 %v278_v49  ;;  %295 = vmatpush3.bf16.msra.mxu1 %v278_v49 }
  0x5b   :  { %170 = vmatmul.mubr.f32.vlgmr.msra.gmra.mrb[0].mxu0 %v69_v50  ;;  %175 = vmatmul.mubr.f32.vlgmr.msra.gmra.mrb[0].mxu1 %v71_v51 }
 0x12e   :  { %v242_v52 = vpop.f32.mrb[0].mxu0  ;;  %v245_v53 = vpop.f32.mrb[0].mxu1 }
 0x12f   :  { %v243_v55 = vpop.f32.mrb[1].mxu0  ;;  %v246_v56 = vpop.f32.mrb[1].mxu1 }
 0x130   :  { %v244_v57 = vadd.f32 %v243_v55, %v242_v52  ;;  %v247_v58 = vadd.f32 %v246_v56, %v245_v53 }
 0x132   :  { %v180_v59 = vadd.f32 %v244_v57, %v209_v54  ;;  %v181_v60 = vadd.f32 %v247_v58, %v209_v54 }
 0x134   :  { %189 = vst [vmem:[#allocation9] sm:$0xff] %v180_v59  ;;  %190 = vst [vmem:[#allocation9 + $0x8] sm:$0xff] %v181_v60 }
 0x135   :  { %381 = shalt.err (!%p378_p0)
}
 0x136   :  { %s382_s30 = scalar_lea.hbm %s483_s3, 256 }
 0x137   :  { %p383_p1 = scmp.ne.s32.totalorder %s483_s3, %s382_s30  ;;  %p386_p2 = scmp.lt.u32.totalorder %s382_s30, %s483_s3 }
 0x139   :  { %p388_p3 = pnand %p386_p2, %p383_p1 }
 0x13b   :  { %391 = shalt.err (!%p388_p3)
}
 0x13c   :  { %202 = dma.vmem_to_hbm [thread:$0]  %s197_s26, 256, %s483_s3, [#allocation5], %s399_s22, %s399_s22, %s400_s23  }
 0x13d   :  { %396 = dma.done.wait [#allocation5], 256  }
 0x13e   :  { %397 = vsyncadd [#allocation5], 4294967040 }
 0x13f   :  { %206 = vsyncpa [#allocation4], 1 }
 0x140   :  { %207 = vsyncpa [#allocation7], 1 }
 0x141   :  { %208 = vsyncpa [#allocation5], 1 }

</bundles_post_ra>
